<compile_context>
chip_gen: v7x
topology: tpu7x:2x2x1
jax: 0.10.0
libtpu: 0.0.40
codegen_flags: <defaults>
</compile_context>

<pallas_src>
import jax
import jax.numpy as jnp
from jax.experimental import pallas as pl
from jax.experimental.pallas import tpu as pltpu

EPS = 1e-6      # vector-norm epsilon (module-level EPS in the PyTorch code)
BN_EPS = 1e-5   # nn.BatchNorm1d default eps


def _vnt_bn_kernel(x_ref, w_ref, b_ref, o_ref):
    # x_ref / o_ref: [B, C_tile, 3*N]  (channels on sublanes; the three vector
    #                                   components are contiguous lane chunks
    #                                   of width N each)
    # w_ref / b_ref: [C_tile, 1]
    B, Ct, three_n = x_ref.shape
    N = three_n // 3
    inv_n = 1.0 / N
    inv_bn = 1.0 / (B * N)

    # --- per-component load (f32 compute) + center over the samples axis ----
    xc = []
    mean = []
    for k in range(3):
        xk = x_ref[:, :, k * N:(k + 1) * N].astype(jnp.float32)   # [B, Ct, N]
        mk = jnp.sum(xk, axis=2, keepdims=True) * inv_n           # [B, Ct, 1]
        mean.append(mk)
        xc.append(xk - mk)

    # --- L2 norm over the 3-vector axis: 3 dense VPU ops, no cross-lane work -
    sq = xc[0] * xc[0] + xc[1] * xc[1] + xc[2] * xc[2]            # [B, Ct, N]
    norm = jnp.sqrt(sq) + EPS                                     # [B, Ct, N]

    # --- BatchNorm1d batch statistics over (B, N) ----------------------------
    # Two-pass variance: the second sweep is over VMEM-resident data (free for
    # a mem-bound kernel) and avoids E[x^2]-E[x]^2 cancellation.
    mu = jnp.sum(norm, axis=(0, 2), keepdims=True) * inv_bn       # [1, Ct, 1]
    d = norm - mu                                                 # [B, Ct, N]
    var = jnp.sum(d * d, axis=(0, 2), keepdims=True) * inv_bn     # biased var
    inv_std = jax.lax.rsqrt(var + BN_EPS)                         # [1, Ct, 1]

    w = w_ref[...][None, :, :]                                    # [1, Ct, 1]
    b = b_ref[...][None, :, :]
    gain = inv_std * w                                            # [1, Ct, 1]

    # Exact reciprocal: kernel is HBM-bound so the extra EUP work is hidden,
    # and it keeps the result tight against the reference (1e-5 tolerance).
    inv_norm = pl.reciprocal(norm, approx=False)                  # [B, Ct, N]
    scale = (d * gain + b) * inv_norm                             # [B, Ct, N]

    # --- component-by-component writeback (lower peak VMEM) ------------------
    for k in range(3):
        o_ref[:, :, k * N:(k + 1) * N] = (xc[k] * scale + mean[k]).astype(o_ref.dtype)


def _vmem_limit_bytes():
    """~3/4 of physical VMEM, capped at 96 MiB (48 MiB on v7x's 64 MiB parts)."""
    try:
        cap = pltpu.get_tpu_info().vmem_capacity_bytes
    except Exception:
        cap = 64 * 1024 * 1024  # conservative default (v7x per-core VMEM)
    return min(int(cap) * 3 // 4, 96 * 1024 * 1024)


def _choose_c_tile(B, C, N, itemsize, budget_bytes):
    """Largest legal channel tile whose full per-grid-step footprint fits.

    Per-channel footprint of one grid step:
      2x double-buffered input block + 2x output block (native dtype)
      + ~3 block-sized f32 intermediates (xc components, norm, scale, ...).
    """
    per_chan = B * 3 * N * (4 * itemsize + 3 * 4)
    max_ct = max(1, budget_bytes // per_chan)
    if C % 16 == 0:
        # Guarantee >= 2 grid steps so pipelining / v7x megacore actually engage.
        max_ct = min(max_ct, C // 2)
    ct = min(max_ct, C)
    ct = (ct // 8) * 8                 # sublane dim: multiple of 8 ...
    while ct >= 8 and C % ct != 0:     # ... that evenly divides C
        ct -= 8
    if ct < 8:
        # No legal budget-respecting tile (tiny C or huge B*N): fall back to
        # the full channel axis (legal via the "equals full dim" rule).
        # TODO(synk): two-pass stats/apply scheme needed for very large B*N.
        ct = C
    return ct


def vnt_batchnorm(x, weight, bias):
    """VNTBatchNorm (dim=4) forward.

    x: [B, C, 3, N] ; weight / bias: [C] (BatchNorm1d affine parameters).
    """
    B, C, V, N = x.shape
    assert V == 3, "vector dimension must be 3"

    # Free layout change: merge the trailing contiguous (3, N) dims.
    x2 = x.reshape(B, C, 3 * N)                                  # no HBM traffic
    w = weight.reshape(C, 1).astype(jnp.float32)                 # sublane-aligned
    b = bias.reshape(C, 1).astype(jnp.float32)

    vmem_limit = _vmem_limit_bytes()
    ct = _choose_c_tile(B, C, N, jnp.dtype(x.dtype).itemsize,
                        budget_bytes=vmem_limit - (2 << 20))
    grid = (pl.cdiv(C, ct),)

    out2 = pl.pallas_call(
        _vnt_bn_kernel,
        out_shape=jax.ShapeDtypeStruct((B, C, 3 * N), x.dtype),   # native dtype I/O
        grid_spec=pltpu.PrefetchScalarGridSpec(
            num_scalar_prefetch=0,
            grid=grid,
            in_specs=[
                pl.BlockSpec((B, ct, 3 * N), lambda c: (0, c, 0)),
                pl.BlockSpec((ct, 1), lambda c: (c, 0)),
                pl.BlockSpec((ct, 1), lambda c: (c, 0)),
            ],
            out_specs=pl.BlockSpec((B, ct, 3 * N), lambda c: (0, c, 0)),
        ),
        compiler_params=pltpu.CompilerParams(
            dimension_semantics=("parallel",),          # megacore on v7x
            vmem_limit_bytes=vmem_limit,
        ),
    )(x2, w, b)

    return out2.reshape(B, C, 3, N)                              # free reshape back


def _reference(x, weight, bias):
    # Pure-JAX reference mirroring the PyTorch forward (training-mode BN).
    x = x.astype(jnp.float32)
    mean_val = jnp.mean(x, axis=3, keepdims=True)
    xc = x - mean_val
    norm = jnp.linalg.norm(xc, axis=2) + EPS                     # [B, C, N]
    mu = jnp.mean(norm, axis=(0, 2), keepdims=True)
    var = jnp.mean((norm - mu) ** 2, axis=(0, 2), keepdims=True)
    norm_bn = (norm - mu) / jnp.sqrt(var + BN_EPS)
    norm_bn = norm_bn * weight[None, :, None] + bias[None, :, None]
    return xc / norm[:, :, None, :] * norm_bn[:, :, None, :] + mean_val


if __name__ == "__main__":
    # dim=4 case of VNTBatchNorm: x of shape [B, num_features, 3, N_samples].
    # C=16 -> channel tile 8, grid=(2,) so pipelining / megacore engage;
    # N=128 keeps component chunks lane-aligned (3*N = 384 lanes).
    B, C, N = 2, 16, 128
    key = jax.random.PRNGKey(0)
    kx, kw, kb = jax.random.split(key, 3)
    x = jax.random.normal(kx, (B, C, 3, N), dtype=jnp.float32)
    weight = 1.0 + 0.1 * jax.random.normal(kw, (C,), dtype=jnp.float32)
    bias = 0.1 * jax.random.normal(kb, (C,), dtype=jnp.float32)

    out = jax.block_until_ready(vnt_batchnorm(x, weight, bias))
    ref = _reference(x, weight, bias)

    assert out.shape == x.shape and out.dtype == x.dtype
    assert jnp.allclose(out, ref, rtol=1e-5, atol=1e-5), "mismatch vs reference"

    print("KERNEL_OK")
</pallas_src>

<mosaic_0001>
module attributes {stable_mosaic.version = 11 : i64} {
  func.func @_vnt_bn_kernel(%arg0: i32, %arg1: memref<2x8x384xf32, #tpu.memory_space<vmem>>, %arg2: memref<8x1xf32, #tpu.memory_space<vmem>>, %arg3: memref<8x1xf32, #tpu.memory_space<vmem>>, %arg4: memref<2x8x384xf32, #tpu.memory_space<vmem>>) attributes {dimension_semantics = [#tpu.dimension_semantics<parallel>], iteration_bounds = array<i64: 2>, scalar_prefetch = 0 : i64, scratch_operands = 0 : i64, tpu.core_type = #tpu.core_type<tc>, window_params = [{transform_indices = @transform_0, window_bounds = array<i64: 2, 8, 384>}, {transform_indices = @transform_1, window_bounds = array<i64: 8, 1>}, {transform_indices = @transform_2, window_bounds = array<i64: 8, 1>}, {transform_indices = @transform_3, window_bounds = array<i64: 2, 8, 384>}]} {
    %c0 = arith.constant 0 : index
    %c0_0 = arith.constant 0 : index
    %c0_1 = arith.constant 0 : index
    %0 = vector.load %arg1[%c0, %c0_0, %c0_1] : memref<2x8x384xf32, #tpu.memory_space<vmem>>, vector<2x8x128xf32>
    %cst = arith.constant dense<0.000000e+00> : vector<2x8xf32>
    %1 = vector.multi_reduction <add>, %0, %cst [2] : vector<2x8x128xf32> to vector<2x8xf32>
    %2 = vector.shape_cast %1 : vector<2x8xf32> to vector<2x8x1xf32>
    %cst_2 = arith.constant 7.812500e-03 : f32
    %3 = vector.broadcast %cst_2 : f32 to vector<2x8x1xf32>
    %4 = arith.mulf %2, %3 : vector<2x8x1xf32>
    %5 = vector.broadcast %4 : vector<2x8x1xf32> to vector<2x8x128xf32>
    %6 = arith.subf %0, %5 : vector<2x8x128xf32>
    %c0_3 = arith.constant 0 : index
    %c0_4 = arith.constant 0 : index
    %c128 = arith.constant 128 : index
    %7 = vector.load %arg1[%c0_3, %c0_4, %c128] : memref<2x8x384xf32, #tpu.memory_space<vmem>>, vector<2x8x128xf32>
    %cst_5 = arith.constant dense<0.000000e+00> : vector<2x8xf32>
    %8 = vector.multi_reduction <add>, %7, %cst_5 [2] : vector<2x8x128xf32> to vector<2x8xf32>
    %9 = vector.shape_cast %8 : vector<2x8xf32> to vector<2x8x1xf32>
    %cst_6 = arith.constant 7.812500e-03 : f32
    %10 = vector.broadcast %cst_6 : f32 to vector<2x8x1xf32>
    %11 = arith.mulf %9, %10 : vector<2x8x1xf32>
    %12 = vector.broadcast %11 : vector<2x8x1xf32> to vector<2x8x128xf32>
    %13 = arith.subf %7, %12 : vector<2x8x128xf32>
    %c0_7 = arith.constant 0 : index
    %c0_8 = arith.constant 0 : index
    %c256 = arith.constant 256 : index
    %14 = vector.load %arg1[%c0_7, %c0_8, %c256] : memref<2x8x384xf32, #tpu.memory_space<vmem>>, vector<2x8x128xf32>
    %cst_9 = arith.constant dense<0.000000e+00> : vector<2x8xf32>
    %15 = vector.multi_reduction <add>, %14, %cst_9 [2] : vector<2x8x128xf32> to vector<2x8xf32>
    %16 = vector.shape_cast %15 : vector<2x8xf32> to vector<2x8x1xf32>
    %cst_10 = arith.constant 7.812500e-03 : f32
    %17 = vector.broadcast %cst_10 : f32 to vector<2x8x1xf32>
    %18 = arith.mulf %16, %17 : vector<2x8x1xf32>
    %19 = vector.broadcast %18 : vector<2x8x1xf32> to vector<2x8x128xf32>
    %20 = arith.subf %14, %19 : vector<2x8x128xf32>
    %21 = arith.mulf %6, %6 : vector<2x8x128xf32>
    %22 = arith.mulf %13, %13 : vector<2x8x128xf32>
    %23 = arith.addf %21, %22 : vector<2x8x128xf32>
    %24 = arith.mulf %20, %20 : vector<2x8x128xf32>
    %25 = arith.addf %23, %24 : vector<2x8x128xf32>
    %26 = math.sqrt %25 : vector<2x8x128xf32>
    %cst_11 = arith.constant 9.99999997E-7 : f32
    %27 = vector.broadcast %cst_11 : f32 to vector<2x8x128xf32>
    %28 = arith.addf %26, %27 : vector<2x8x128xf32>
    %cst_12 = arith.constant dense<0.000000e+00> : vector<8xf32>
    %29 = vector.multi_reduction <add>, %28, %cst_12 [0, 2] : vector<2x8x128xf32> to vector<8xf32>
    %30 = vector.shape_cast %29 : vector<8xf32> to vector<1x8x1xf32>
    %cst_13 = arith.constant 3.906250e-03 : f32
    %31 = vector.broadcast %cst_13 : f32 to vector<1x8x1xf32>
    %32 = arith.mulf %30, %31 : vector<1x8x1xf32>
    %33 = vector.broadcast %32 : vector<1x8x1xf32> to vector<2x8x128xf32>
    %34 = arith.subf %28, %33 : vector<2x8x128xf32>
    %35 = arith.mulf %34, %34 : vector<2x8x128xf32>
    %cst_14 = arith.constant dense<0.000000e+00> : vector<8xf32>
    %36 = vector.multi_reduction <add>, %35, %cst_14 [0, 2] : vector<2x8x128xf32> to vector<8xf32>
    %37 = vector.shape_cast %36 : vector<8xf32> to vector<1x8x1xf32>
    %cst_15 = arith.constant 3.906250e-03 : f32
    %38 = vector.broadcast %cst_15 : f32 to vector<1x8x1xf32>
    %39 = arith.mulf %37, %38 : vector<1x8x1xf32>
    %cst_16 = arith.constant 9.99999974E-6 : f32
    %40 = vector.broadcast %cst_16 : f32 to vector<1x8x1xf32>
    %41 = arith.addf %39, %40 : vector<1x8x1xf32>
    %42 = math.rsqrt %41 : vector<1x8x1xf32>
    %c0_17 = arith.constant 0 : index
    %c0_18 = arith.constant 0 : index
    %43 = vector.load %arg2[%c0_17, %c0_18] : memref<8x1xf32, #tpu.memory_space<vmem>>, vector<8x1xf32>
    %44 = vector.shape_cast %43 : vector<8x1xf32> to vector<1x8x1xf32>
    %c0_19 = arith.constant 0 : index
    %c0_20 = arith.constant 0 : index
    %45 = vector.load %arg3[%c0_19, %c0_20] : memref<8x1xf32, #tpu.memory_space<vmem>>, vector<8x1xf32>
    %46 = vector.shape_cast %45 : vector<8x1xf32> to vector<1x8x1xf32>
    %47 = arith.mulf %42, %44 : vector<1x8x1xf32>
    %48 = tpu.reciprocal %28 : vector<2x8x128xf32> -> vector<2x8x128xf32>
    %49 = vector.broadcast %47 : vector<1x8x1xf32> to vector<2x8x128xf32>
    %50 = arith.mulf %34, %49 : vector<2x8x128xf32>
    %51 = vector.broadcast %46 : vector<1x8x1xf32> to vector<2x8x128xf32>
    %52 = arith.addf %50, %51 : vector<2x8x128xf32>
    %53 = arith.mulf %52, %48 : vector<2x8x128xf32>
    %54 = arith.mulf %6, %53 : vector<2x8x128xf32>
    %55 = vector.broadcast %4 : vector<2x8x1xf32> to vector<2x8x128xf32>
    %56 = arith.addf %54, %55 : vector<2x8x128xf32>
    %c0_21 = arith.constant 0 : index
    %c0_22 = arith.constant 0 : index
    %c0_23 = arith.constant 0 : index
    %57 = vector.load %arg4[%c0_21, %c0_22, %c0_23] : memref<2x8x384xf32, #tpu.memory_space<vmem>>, vector<2x8x128xf32>
    tpu.vector_store %arg4[%c0_21, %c0_22, %c0_23], %56 {strides = array<i32>} : memref<2x8x384xf32, #tpu.memory_space<vmem>>, vector<2x8x128xf32>,
    %58 = arith.mulf %13, %53 : vector<2x8x128xf32>
    %59 = vector.broadcast %11 : vector<2x8x1xf32> to vector<2x8x128xf32>
    %60 = arith.addf %58, %59 : vector<2x8x128xf32>
    %c0_24 = arith.constant 0 : index
    %c0_25 = arith.constant 0 : index
    %c128_26 = arith.constant 128 : index
    %61 = vector.load %arg4[%c0_24, %c0_25, %c128_26] : memref<2x8x384xf32, #tpu.memory_space<vmem>>, vector<2x8x128xf32>
    tpu.vector_store %arg4[%c0_24, %c0_25, %c128_26], %60 {strides = array<i32>} : memref<2x8x384xf32, #tpu.memory_space<vmem>>, vector<2x8x128xf32>,
    %62 = arith.mulf %20, %53 : vector<2x8x128xf32>
    %63 = vector.broadcast %18 : vector<2x8x1xf32> to vector<2x8x128xf32>
    %64 = arith.addf %62, %63 : vector<2x8x128xf32>
    %c0_27 = arith.constant 0 : index
    %c0_28 = arith.constant 0 : index
    %c256_29 = arith.constant 256 : index
    %65 = vector.load %arg4[%c0_27, %c0_28, %c256_29] : memref<2x8x384xf32, #tpu.memory_space<vmem>>, vector<2x8x128xf32>
    tpu.vector_store %arg4[%c0_27, %c0_28, %c256_29], %64 {strides = array<i32>} : memref<2x8x384xf32, #tpu.memory_space<vmem>>, vector<2x8x128xf32>,
    return
  }
  func.func @transform_0(%arg0: i32) -> (i32, i32, i32) {
    %c0_i32 = arith.constant 0 : i32
    %c0_i32_0 = arith.constant 0 : i32
    %c0_i32_1 = arith.constant 0 : i32
    return %c0_i32, %arg0, %c0_i32_0 : i32, i32, i32
  }
  func.func @transform_1(%arg0: i32) -> (i32, i32) {
    %c0_i32 = arith.constant 0 : i32
    %c0_i32_0 = arith.constant 0 : i32
    return %arg0, %c0_i32 : i32, i32
  }
  func.func @transform_2(%arg0: i32) -> (i32, i32) {
    %c0_i32 = arith.constant 0 : i32
    %c0_i32_0 = arith.constant 0 : i32
    return %arg0, %c0_i32 : i32, i32
  }
  func.func @transform_3(%arg0: i32) -> (i32, i32, i32) {
    %c0_i32 = arith.constant 0 : i32
    %c0_i32_0 = arith.constant 0 : i32
    %c0_i32_1 = arith.constant 0 : i32
    return %c0_i32, %arg0, %c0_i32_0 : i32, i32, i32
  }
}

</mosaic_0001>

<bundles_post_ra>
// kernel: tpu_custom_call.1
= control target key start
LH: loop header
LB: loop body
LE: loop exit
PB: predicated region body
PF: predicated region fallthrough
CT: control target
= control target key end

     0   :  { %8 = vsyncpa [#allocation3], 0  ;;  %s873_s0 = inlined_call_operand.hbm [shape: f32[2,16,384], index: 0, kind: input, shape index: {}]   ;;  %s874_s1 = inlined_call_operand.vmem [shape: f32[16,1], index: 1, kind: input, shape index: {}]   ;;  %s875_s2 = inlined_call_operand.vmem [shape: f32[16,1], index: 2, kind: input, shape index: {}]   ;;  %s876_s3 = inlined_call_operand.hbm [shape: f32[2,16,384], index: 3, kind: output, shape index: {}]  }
   0x1   :  { %10 = vsyncpa [#allocation3 + $0x1], 0 }
   0x2   :  { %11 = vsyncpa [#allocation4], 0 }
   0x3   :  { %13 = vsyncpa [#allocation4 + $0x1], 0  ;;  %s649_s12 = smov 0   ;;  %s651_s13 = smov 0  }
   0x4   :  { %s653_s14 = smov 0   ;;  %s655_s15 = smov 0  }
   0x5 LB: > { %s670_s16 = sadd.s32 4294967295, %s618_s15   ;;  %s443_s17 = sadd.s32 4294967294, %s618_s15   ;;  %s618_s15 = sphi %s655_s15, %s889_s15   ;;  %s614_s14 = sphi %s653_s14, %s888_s14   ;;  %s610_s13 = sphi %s651_s13, %s887_s13   ;;  %s606_s12 = sphi %s649_s12, %s886_s12  }
   0x6   : > { %s674_s18 = sadd.s32 1, %s618_s15   ;;  %s26_s19 = sadd.s32 1, %s614_s14 }
   0x7   : > { %s23_s20 = ssub.s32 %s618_s15, %s674_s18  ;;  %p33_p0 = scmp.ne.s32.totalorder %s614_s14, %s610_s13 }
   0x8   : > { %p24_p1 = scmp.eq.s32.totalorder %s23_s20, 0  ;;  %p34_p2 = scmp.eq.s32.totalorder %s618_s15, 0 }
   0x9   : > { %p39_p3 = scmp.ne.s32.totalorder %s610_s13, %s606_s12  ;;  %p40_p4 = scmp.eq.s32.totalorder %s670_s16, 0 }
   0xa   : > { %s686_s21 = scalar_select %p24_p1, %s614_s14, %s26_s19  }
   0xb   : > { %p35_p5 = por %p34_p2, %p33_p0  ;;  %p688_p6 = por %p40_p4, %p39_p3 }
   0xc   : > { %p115_p7 = scmp.eq.s32.totalorder %s670_s16, 1  ;;  %p121_p8 = scmp.eq.s32.totalorder %s443_s17, 1 }
   0xd   : > { %p469_p10 = scmp.lt.s32.totalorder %s618_s15, 2  ;;  %s141_s25 = sand.u32 1, %s614_s14  }
   0xe   : > { %p695_p11 = por %p115_p7, %p33_p0  ;;  %p699_p12 = por %p121_p8, %p39_p3 }
   0xf   : > { %s454_s26 = smul.u32 384, %s618_s15  ;;  %p710_p13 = pnand %p469_p10, %p35_p5 }
  0x10   : > { %s879_s23 = scalar_select %p695_p11, 1, 0 }
  0x11   : > { %s880_s24 = scalar_select %p699_p12, 1, 0 }
  0x12   : > { %s453_s27 = smul.u32 48, %s141_s25  ;;  %s708_s30 = scalar_lea.hbm %s873_s0, %s454_s26 }
  0x13   : > { %s717_s7 = scalar_lea.sflag [#allocation3], %s141_s25  ;;  %s522_s8 = scalar_lea.hbm %s708_s30, 768 }
  0x14   : > { %s145_s5 = scalar_lea.vmem [#allocation2], %s453_s27  ;;  %p523_p1 = scmp.ne.s32.totalorder %s708_s30, %s522_s8 }
  0x15   : > { %s152_s6 = sshll.u32 %s145_s5, 4  ;;  %p524_p2 = pneg %p710_p13  ;;  %s714_s6 = int_to_ptr.vmem [resolvable:$true] %s152_s6 }
  0x16   : > { %s527_s11 = scalar_lea.hbm %s873_s0, 1536  ;;  %p528_p5 = scmp.lt.u32.totalorder %s708_s30, %s873_s0 }
  0x17   : > { %p525_p3 = pnand %p524_p2, %p523_p1  ;;  %p529_p7 = scmp.lt.u32.totalorder %s527_s11, %s522_s8 }
  0x18   : > { %p531_p10 = scmp.lt.u32.totalorder %s522_s8, %s708_s30 }
  0x19   : > { %p526_p4 = pneg %p525_p3  ;;  %p530_p8 = por %p529_p7, %p528_p5 }
  0x1b   : > { %p532_p9 = por %p531_p10, %p530_p8 }
  0x1d   : > { %p533_p0 = pnand %p532_p9, %p526_p4 }
  0x1f   : > { %536 = shalt.err (!%p533_p0)
}
  0x20   : > { %s537_s20 = scalar_lea.vmem %s714_s6, 768  ;;  %s620_s25 = smov [#allocation2]  }
  0x21   : > { %p538_p1 = scmp.ne.s32.totalorder %s714_s6, %s537_s20  ;;  %s542_s26 = sshll.u32 %s620_s25, 4  ;;  %s543_s26 = int_to_ptr.vmem [resolvable:$false] %s542_s26 }
  0x22   : > { %s544_s27 = scalar_lea.vmem %s543_s26, 1536  ;;  %p545_p11 = scmp.lt.s32.totalorder %s714_s6, %s543_s26 }
  0x23   : > { %p540_p3 = pnand %p538_p1, %p524_p2  ;;  %p546_p5 = scmp.lt.s32.totalorder %s544_s27, %s537_s20 }
  0x25   : > { %p541_p12 = pneg %p540_p3  ;;  %p547_p7 = por %p546_p5, %p545_p11 }
  0x27   : > { %p548_p8 = pnand %p547_p7, %p541_p12 }
  0x29   : > { %551 = shalt.err (!%p548_p8)
}
  0x2a   : > { %s621_s28 = smov 768   ;;  %s622_s29 = smov 384  }
  0x2b   : > { %s623_s5 = smov 24   ;;  %p174_p9 = scmp.lt.s32.totalorder %s618_s15, 3 }
  0x2c   : > { %464 = dma.hbm_to_vmem [thread:$0]  (!%p710_p13), %s708_s30, 768, %s714_s6, %s717_s7, %s621_s28, %s622_s29, %s623_s5  }
  0x2d   : > { %p882_p0 = scmp.ge.s32.totalorder %s618_s15, 1 }
  0x2f   : > { %p175_p2 = pnand %p882_p0, %p174_p9 }
  0x30   : > { %s749_s8 = sand.u32 (!%p175_p2), 1, %s610_s13  }
  0x31   : > { %178 = sbr.rel (%p175_p2) target bundleno = 701 (0x2bd), region = 32  ;;  %s181_s10 = scalar_lea.sflag (!%p175_p2), [#allocation3], %s749_s8 }
  0x32   : > { %s455_s9 = smul.u32 (!%p175_p2), 48, %s749_s8 }
  0x34   : > { %s184_s11 = scalar_lea.vmem (!%p175_p2), [#allocation2], %s455_s9 }
  0x38   : > { %597 = dma.done.wait (%p688_p6), %s181_s10, 768  }
  0x39   : > { %599 = vsyncadd (%p688_p6), %s181_s10, 4294966528  ;;  %v233_v0 = vld [vmem:[%s184_s11 + $0x8] sm:$0xff]  ;;  %v223_v1 = vld [vmem:[%s184_s11] sm:$0xff]  ;;  %v624_v54 = vmov 0   ;;  %p215_p6 = scmp.lt.s32.totalorder %s670_s16, 1  ;;  %s214_s25 = scalar_lea.vmem [#allocation5], %s455_s9 }
  0x3a   : > { %235 = vadd.xlane.f32.xlu1 %v233_v0  ;;  %225 = vadd.xlane.f32.xlu0 %v223_v1  ;;  %v234_v2 = vld [vmem:[%s184_s11 + $0x20] sm:$0xff]  ;;  %v224_v3 = vld [vmem:[%s184_s11 + $0x18] sm:$0xff]  ;;  %v244_v4 = vld [vmem:[%s184_s11 + $0x28] sm:$0xff]  ;;  %s346_s26 = sshll.u32 %s214_s25, 4  ;;  %s456_s27 = smul.u32 384, %s670_s16  ;;  %s816_s26 = int_to_ptr.vmem [resolvable:$true] %s346_s26 }
  0x3b   : > { %v243_v5 = vld [vmem:[%s184_s11 + $0x10] sm:$0xff]  ;;  %510 = vset.pattern.permute.xlu0 %v624_v54  ;;  %511 = vset.pattern.permute.xlu1 %v624_v54  ;;  %s216_s22 = scalar_select %p215_p6, %s670_s16, 1 }
  0x3c   : > { %s827_s29 = scalar_lea.hbm %s876_s3, %s456_s27  ;;  %s333_s5 = scalar_lea.sflag [#allocation4], %s749_s8 }
  0x3d   : > { %s448_s30 = sshll.u32 %s216_s22, 3  ;;  %s552_s9 = scalar_lea.vmem %s816_s26, 768 }
  0x3e   : > { %237 = vadd.xlane.f32.xlu1 %v234_v2  ;;  %227 = vadd.xlane.f32.xlu0 %v224_v3  ;;  %s222_s7 = scalar_lea.vmem %s875_s2, %s448_s30  ;;  %s218_s20 = scalar_lea.vmem %s874_s1, %s448_s30 }
  0x3f   : > { %v294_v55 = vld [vmem:[%s222_s7] sm:$0xff]  ;;  %p553_p11 = scmp.ne.s32.totalorder %s816_s26, %s552_s9  ;;  %p883_p12 = scmp.ne.s32.totalorder %s879_s23, 0 }
  0x40   : > { %v293_v59 = vld [vmem:[%s218_s20] sm:$0xff]  ;;  %s625_s10 = smov [#allocation5]  }
  0x41   : > { %p554_p13 = pnand %p553_p11, %p883_p12  ;;  %s556_s11 = sshll.u32 %s625_s10, 4  ;;  %s557_s11 = int_to_ptr.vmem [resolvable:$false] %s556_s11 }
  0x42   : > { %247 = vadd.xlane.f32.xlu1 %v244_v4  ;;  %245 = vadd.xlane.f32.xlu0 %v243_v5  ;;  %s558_s22 = scalar_lea.vmem %s557_s11, 1536  ;;  %p559_p10 = scmp.lt.s32.totalorder %s816_s26, %s557_s11 }
  0x43   : > { %p555_p4 = pneg %p554_p13  ;;  %p560_p1 = scmp.lt.s32.totalorder %s558_s22, %s552_s9 }
  0x45   : > { %p561_p3 = por %p560_p1, %p559_p10 }
  0x47   : > { %p562_p5 = pnand %p561_p3, %p555_p4 }
  0xc7   : > { %v236_v6 = vpop.xlane.xlu1 %235  ;;  %v226_v7 = vpop.xlane.xlu0 %225 }
  0xc8   : > { %v759_v8 = vmul.f32 0.0078125, %v236_v6  ;;  %v761_v9 = vmul.f32 0.0078125, %v226_v7 }
  0xca   : > { %v764_v10 = vsub.f32 %v233_v0, %v759_v8  ;;  %v767_v11 = vsub.f32 %v223_v1, %v761_v9 }
  0xcb   : > { %v238_v12 = vpop.xlane.xlu1 %237  ;;  %v228_v13 = vpop.xlane.xlu0 %227 }
  0xcc   : > { %v769_v14 = vmul.f32 0.0078125, %v238_v12  ;;  %v771_v15 = vmul.f32 0.0078125, %v228_v13  ;;  %v255_v18 = vmul.f32 %v764_v10, %v764_v10  ;;  %v253_v19 = vmul.f32 %v767_v11, %v767_v11 }
  0xce   : > { %v774_v16 = vsub.f32 %v234_v2, %v769_v14  ;;  %v777_v17 = vsub.f32 %v224_v3, %v771_v15  ;;  %v257_v28 = vadd.f32 %v255_v18, %v253_v19 }
  0xcf   : > { %v248_v20 = vpop.xlane.xlu1 %247  ;;  %v246_v21 = vpop.xlane.xlu0 %245 }
  0xd0   : > { %v256_v22 = vmul.f32 %v774_v16, %v774_v16  ;;  %v254_v23 = vmul.f32 %v777_v17, %v777_v17  ;;  %v787_v24 = vmul.f32 0.0078125, %v248_v20  ;;  %v789_v25 = vmul.f32 0.0078125, %v246_v21 }
  0xd2   : > { %v792_v26 = vsub.f32 %v244_v4, %v787_v24  ;;  %v795_v27 = vsub.f32 %v243_v5, %v789_v25  ;;  %v258_v29 = vadd.f32 %v256_v22, %v254_v23 }
  0xd4   : > { %v260_v30 = vmul.f32 %v792_v26, %v792_v26  ;;  %v259_v31 = vmul.f32 %v795_v27, %v795_v27 }
  0xd6   : > { %v262_v32 = vadd.f32 %v260_v30, %v258_v29  ;;  %v261_v33 = vadd.f32 %v259_v31, %v257_v28 }
  0xd8   : > { %512 = vrsqrt.f32 %v261_v33  ;;  %vm265_vm0 = vcmp.eq.f32.partialorder %v261_v33, inf  ;;  %v268_v37 = vand.u32 2147483648, %v261_v33  ;;  %vm267_vm1 = vcmp.eq.f32.partialorder %v261_v33, 0.0 }
  0xd9   : > { %514 = vrsqrt.f32 %v262_v32  ;;  %vm272_vm2 = vcmp.eq.f32.partialorder %v262_v32, inf  ;;  %v275_v40 = vand.u32 2147483648, %v262_v32  ;;  %vm274_vm3 = vcmp.eq.f32.partialorder %v262_v32, 0.0 }
  0xe2   : > { %v513_v34 = vpop.eup %512 }
  0xe3   : > { %v515_v35 = vpop.eup %514  ;;  %v264_v36 = vmul.f32 %v513_v34, %v261_v33 }
  0xe4   : > { %v271_v38 = vmul.f32 %v515_v35, %v262_v32 }
  0xe5   : > { %v266_v39 = vsel %vm265_vm0, %v261_v33, %v264_v36 }
  0xe6   : > { %v269_v41 = vsel %vm267_vm1, %v268_v37, %v266_v39  ;;  %v273_v42 = vsel %vm272_vm2, %v262_v32, %v271_v38 }
  0xe7   : > { %v276_v43 = vsel %vm274_vm3, %v275_v40, %v273_v42  ;;  %v277_v44 = vadd.f32 1e-06, %v269_v41 }
  0xe8   : > { %v278_v45 = vadd.f32 1e-06, %v276_v43 }
  0xea   : > { %v279_v46 = vadd.f32 %v278_v45, %v277_v44 }
  0xec   : > { %280 = vadd.xlane.f32.xlu0 %v279_v46 }
 0x179   : > { %v281_v47 = vpop.xlane.xlu0 %280 }
 0x17a   : > { %v282_v48 = vmul.f32 0.00390625, %v281_v47 }
 0x17c   : > { %v283_v49 = vsub.f32 %v277_v44, %v282_v48  ;;  %v284_v50 = vsub.f32 %v278_v45, %v282_v48 }
 0x17e   : > { %v285_v51 = vmul.f32 %v283_v49, %v283_v49  ;;  %v286_v52 = vmul.f32 %v284_v50, %v284_v50 }
 0x180   : > { %v287_v53 = vadd.f32 %v286_v52, %v285_v51 }
 0x182   : > { %288 = vadd.xlane.f32.xlu1 %v287_v53 }
 0x193   : > { %307 = vperm.xlu1 %511, %v294_v55  }
 0x20f   : > { %v289_v56 = vpop.xlane.xlu1 %288 }
 0x210   : > { %v290_v57 = vmul.f32 0.00390625, %v289_v56 }
 0x212   : > { %v291_v58 = vadd.f32 1e-05, %v290_v57 }
 0x213   : > { %v308_v63 = vpop.permute.xlu1 %307 }
 0x214   : > { %516 = vrsqrt.f32 %v291_v58 }
 0x215   : > { %518 = vrcp.f32 %v277_v44 }
 0x216   : > { %520 = vrcp.f32 %v278_v45 }
 0x21e   : > { %v517_v60 = vpop.eup %516 }
 0x21f   : > { %v295_v61 = vmul.f32 %v517_v60, %v293_v59  ;;  %v519_v2 = vpop.eup %518 }
 0x220   : > { %v521_v5 = vpop.eup %520 }
 0x221   : > { %300 = vperm.xlu0 %510, %v295_v61  }
 0x2a0   : > { %v301_v62 = vpop.permute.xlu0 %300 }
 0x2a1   : > { %v303_v0 = vmul.f32 %v301_v62, %v283_v49  ;;  %v304_v1 = vmul.f32 %v301_v62, %v284_v50 }
 0x2a3   : > { %v310_v3 = vadd.f32 %v308_v63, %v303_v0  ;;  %v311_v4 = vadd.f32 %v308_v63, %v304_v1 }
 0x2a5   : > { %v312_v6 = vmul.f32 %v519_v2, %v310_v3  ;;  %v313_v7 = vmul.f32 %v521_v5, %v311_v4 }
 0x2a7   : > { %v314_v12 = vmul.f32 %v312_v6, %v767_v11  ;;  %v315_v13 = vmul.f32 %v313_v7, %v777_v17  ;;  %v320_v18 = vmul.f32 %v312_v6, %v764_v10  ;;  %v321_v19 = vmul.f32 %v313_v7, %v774_v16 }
 0x2a8   : > { %v326_v20 = vmul.f32 %v312_v6, %v795_v27  ;;  %v327_v21 = vmul.f32 %v313_v7, %v792_v26 }
 0x2a9   : > { %v316_v22 = vadd.f32 %v314_v12, %v761_v9  ;;  %v317_v11 = vadd.f32 %v315_v13, %v771_v15  ;;  %v322_v17 = vadd.f32 %v320_v18, %v759_v8  ;;  %v323_v10 = vadd.f32 %v321_v19, %v769_v14 }
 0x2aa   : > { %v328_v16 = vadd.f32 %v326_v20, %v789_v25  ;;  %v329_v23 = vadd.f32 %v327_v21, %v787_v24 }
 0x2ab   : > { %318 = vst [vmem:[%s214_s25] sm:$0xff] %v316_v22  ;;  %319 = vst [vmem:[%s214_s25 + $0x18] sm:$0xff] %v317_v11 }
 0x2ac   : > { %324 = vst [vmem:[%s214_s25 + $0x8] sm:$0xff] %v322_v17  ;;  %325 = vst [vmem:[%s214_s25 + $0x20] sm:$0xff] %v323_v10 }
 0x2ad   : > { %330 = vst [vmem:[%s214_s25 + $0x10] sm:$0xff] %v328_v16  ;;  %331 = vst [vmem:[%s214_s25 + $0x28] sm:$0xff] %v329_v23 }
 0x2ae   : > { %565 = shalt.err (!%p562_p5)
}
 0x2af   : > { %s566_s30 = scalar_lea.hbm %s827_s29, 768  ;;  %s570_s7 = scalar_lea.hbm %s876_s3, 1536 }
 0x2b0   : > { %p567_p7 = scmp.ne.s32.totalorder %s827_s29, %s566_s30  ;;  %p571_p0 = scmp.lt.u32.totalorder %s827_s29, %s876_s3 }
 0x2b1   : > { %p572_p2 = scmp.lt.u32.totalorder %s570_s7, %s566_s30  ;;  %p574_p11 = scmp.lt.u32.totalorder %s566_s30, %s827_s29 }
 0x2b2   : > { %p568_p8 = pnand %p567_p7, %p883_p12 }
 0x2b3   : > { %p573_p6 = por %p572_p2, %p571_p0 }
 0x2b4   : > { %p569_p9 = pneg %p568_p8 }
 0x2b5   : > { %p575_p13 = por %p574_p11, %p573_p6 }
 0x2b7   : > { %p576_p4 = pnand %p575_p13, %p569_p9 }
 0x2b9   : > { %579 = shalt.err (!%p576_p4)
}
 0x2ba   : > { %s626_s20 = smov 384   ;;  %s627_s25 = smov 768  }
 0x2bb   : > { %s628_s27 = smov 24  }
 0x2bc   : > { %459 = dma.vmem_to_hbm [thread:$0]  (%p883_p12), %s816_s26, 768, %s827_s29, %s333_s5, %s626_s20, %s627_s25, %s628_s27  }
 0x2bd PF: > { %s361_s16 = sand.u32 1, %s606_s12   ;;  %p884_p10 = scmp.ne.s32.totalorder %s880_s24, 0 }
 0x2be   : > { %p885_p1 = scmp.ge.s32.totalorder %s618_s15, 2  ;;  %s362_s28 = scalar_lea.sflag [#allocation4], %s361_s16 }
 0x2c0   : > { %p466_p3 = pnand %p885_p1, %p884_p10 }
 0x2c2   : > { %601 = dma.done.wait (!%p466_p3), %s362_s28, 768  }
 0x2c3   : > { %603 = vsyncadd (!%p466_p3), %s362_s28, 4294966528  ;;  %p16_p5 = scmp.ge.s32.totalorder %s674_s18, 4   ;;  %s886_s12 = smov %s610_s13 }
 0x2c4   : > { %s887_s13 = smov %s614_s14  ;;  %s888_s14 = smov %s686_s21 }
 0x2c5   : > { %s889_s15 = smov %s674_s18  ;;  %18 = sbr.rel (!%p16_p5) target bundleno = 5 (0x5), region = 83 }
 0x2cc   :  { %367 = vsyncpa [#allocation3], 1 }
 0x2cd   :  { %369 = vsyncpa [#allocation3 + $0x1], 1 }
 0x2ce   :  { %370 = vsyncpa [#allocation4], 1 }
 0x2cf   :  { %372 = vsyncpa [#allocation4 + $0x1], 1 }

</bundles_post_ra>
